<compile_context>
chip_gen: v5e
topology: v5e:2x2
jax: 0.10.0
libtpu: 0.0.40
codegen_flags: <defaults>
</compile_context>

<pallas_src>
import numpy as np
import jax
import jax.numpy as jnp
from jax.experimental import pallas as pl
from jax.experimental.pallas import tpu as pltpu


def _round_up(x, m):
    return -(-x // m) * m


# ---------------------------------------------------------------------------
# Kernel
# ---------------------------------------------------------------------------
def _make_kernel(tb, L, batch, mask_tail):
    """Fused encoder -> binary quantizer -> decoder kernel for one batch tile."""

    def kernel(x_ref, ew1_r, eb1_r, ew2_r, eb2_r, ew3_r, eb3_r,
               dw1_r, db1_r, dw2_r, db2_r, dw3_r, db3_r,
               recon_ref, loss_ref, idx_ref):

        def dense(a, w_r, b_r):
            # MXU matmul in the weights' dtype, f32 accumulation, f32 bias add.
            return jnp.dot(a.astype(w_r.dtype), w_r[...],
                           preferred_element_type=jnp.float32) + b_r[...]

        # ---- encoder: Linear -> ReLU -> Linear -> ReLU -> Linear ----
        h = jnp.maximum(dense(x_ref[...], ew1_r, eb1_r), 0.0)
        h = jnp.maximum(dense(h, ew2_r, eb2_r), 0.0)
        z = dense(h, ew3_r, eb3_r)                      # (tb, L), float32

        # ---- binary VQ: closed form for the full {0,1}^L hypercube codebook ----
        # Nearest code is per-coordinate thresholding; the strict comparison
        # reproduces torch.argmin's lowest-index tie-break (bit = 0 at z == 0.5).
        quant = (z > 0.5).astype(jnp.float32)           # (tb, L)

        # MSB-first binary index (itertools.product row order).  `powers` is a
        # single (1, L) vreg row; the broadcast in the multiply is free.
        col = jax.lax.broadcasted_iota(jnp.int32, (1, L), 1)
        powers = jnp.left_shift(jnp.int32(1), (L - 1) - col).astype(jnp.float32)
        idx_col = jnp.sum(quant * powers, axis=-1, keepdims=True)   # (tb, 1)
        idx_ref[...] = idx_col.astype(jnp.int32)        # column store, no relayout

        # ---- commitment-loss partial: reduce rows only, keep the L lanes ----
        sq = (quant - z) ** 2
        if mask_tail:
            row = (jax.lax.broadcasted_iota(jnp.int32, (tb, 1), 0)
                   + pl.program_id(0) * tb)
            sq = jnp.where(row < batch, sq, 0.0)        # ignore zero-padded rows
        loss_ref[...] = jnp.sum(sq, axis=0, keepdims=True)[None]    # (1, 1, L)

        # ---- decoder (straight-through: forward value fed is the binary code) ----
        h = jnp.maximum(dense(quant, dw1_r, db1_r), 0.0)
        h = jnp.maximum(dense(h, dw2_r, db2_r), 0.0)
        recon_ref[...] = dense(h, dw3_r, db3_r).astype(recon_ref.dtype)

    return kernel


# ---------------------------------------------------------------------------
# VMEM budgeting / tile selection
# ---------------------------------------------------------------------------
def _weight_vmem_bytes(arrays):
    total = 0
    for a in arrays:
        r, c = a.shape
        total += _round_up(r, 8) * _round_up(c, 128) * a.dtype.itemsize
    return total


def _per_tile_vmem_bytes(tb, D, H, L, x_isz, recon_isz):
    Dp, Hp, Lp = _round_up(D, 128), _round_up(H, 128), _round_up(L, 128)
    io = (2 * tb * Dp * x_isz          # x tile, double-buffered
          + 2 * tb * Dp * recon_isz    # recon tile
          + 2 * tb * 128 * 4           # index column (lane-padded)
          + 2 * 8 * Lp * 4)            # loss partials
    act = 4 * tb * Hp * 4              # headroom for live f32 activations
    return io + act


def _vmem_budget_bytes():
    try:
        phys = pltpu.get_tpu_info().vmem_capacity_bytes
    except Exception:
        phys = 64 << 20                # conservative (v7x per-TensorCore VMEM)
    return int(phys * 0.82)


def _choose_tb(B, D, H, L, weight_bytes, budget, x_isz, recon_isz):
    for tb in (4096, 2048, 1024, 512, 256, 128):
        if tb > B:
            continue
        if tb == B and B >= 256:
            # Keep >= 2 grid steps so the "parallel" batch axis can shard
            # across both TensorCores on v7x.
            continue
        if weight_bytes + _per_tile_vmem_bytes(tb, D, H, L, x_isz, recon_isz) <= budget:
            return tb
    # Tiny-batch / huge-weight fallback: sublane-aligned single-ish tile.
    return 128 if B > 128 else _round_up(max(B, 8), 8)


# ---------------------------------------------------------------------------
# Wrapper
# ---------------------------------------------------------------------------
_WEIGHT_SINGLE_BUFFER_OK = None   # lazily probed: does this jax accept pl.Buffered(1)?


def prepare_params(params, matmul_dtype=jnp.bfloat16):
    """Pre-materialize weights in the MXU dtype once (avoids re-reading f32
    weights from HBM and writing bf16 copies on every forward call)."""
    (ew1, eb1, ew2, eb2, ew3, eb3, dw1, db1, dw2, db2, dw3, db3) = params
    w = lambda a: a.astype(matmul_dtype)
    b = lambda a: a.astype(jnp.float32)
    return (w(ew1), b(eb1), w(ew2), b(eb2), w(ew3), b(eb3),
            w(dw1), b(db1), w(dw2), b(db2), w(dw3), b(db3))


def binary_vqvae_forward(x, params, *, tb=None, matmul_dtype=jnp.bfloat16,
                         recon_dtype=jnp.float32):
    """Forward pass of BinaryVQVAE.

    Returns (x_recon (B, D) recon_dtype, commitment_loss scalar f32,
             encoding_indices (B,) int32).

    Note: only matmul_dtype=jnp.float32 is bit-faithful to the PyTorch module
    near quantizer ties (z ~ 0.5); the bf16 path is the fast inference path.
    """
    global _WEIGHT_SINGLE_BUFFER_OK
    (ew1, eb1, ew2, eb2, ew3, eb3, dw1, db1, dw2, db2, dw3, db3) = params

    B, D = x.shape
    H = ew1.shape[1]
    L = ew3.shape[1]                               # num_latents
    if L > 24:
        raise ValueError("num_latents > 24: f32 index accumulation / int32 "
                         "encoding_indices would lose exactness; use an integer "
                         "accumulation path for such large codebooks.")

    # Weights in the MXU dtype (no-op if pre-materialized via prepare_params);
    # biases and all post-matmul elementwise math stay float32 (v5e-safe).
    ew1m, ew2m, ew3m, dw1m, dw2m, dw3m = (
        w.astype(matmul_dtype) for w in (ew1, ew2, ew3, dw1, dw2, dw3))
    eb1, eb2, eb3, db1, db2, db3 = (
        b.astype(jnp.float32) for b in (eb1, eb2, eb3, db1, db2, db3))
    weight_ops = (ew1m, eb1, ew2m, eb2, ew3m, eb3, dw1m, db1, dw2m, db2, dw3m, db3)
    weight_bytes = _weight_vmem_bytes(weight_ops)

    budget = _vmem_budget_bytes()
    x_isz = x.dtype.itemsize
    recon_isz = np.dtype(recon_dtype).itemsize
    if tb is None:
        tb = _choose_tb(B, D, H, L, weight_bytes, budget, x_isz, recon_isz)
    assert tb % 8 == 0 or tb == B, "batch tile must be sublane-aligned (or == B)"

    n_tiles = -(-B // tb)
    B_pad = n_tiles * tb
    mask_tail = B_pad != B
    # x stays f32 (no wrapper-side cast round-trip); the kernel casts in-VMEM.
    x_in = jnp.pad(x, ((0, B_pad - B), (0, 0))) if mask_tail else x

    # Explicit scoped-VMEM limit sized to the real footprint, with margin for the
    # double-buffered-weights fallback, capped below physical VMEM.
    est = 2 * weight_bytes + _per_tile_vmem_bytes(tb, D, H, L, x_isz, recon_isz) + (8 << 20)
    vmem_limit = int(max(32 << 20, min(budget, est)))

    kernel = _make_kernel(tb, L, B, mask_tail)

    def run(single_buffer_weights):
        if single_buffer_weights:
            # Grid-invariant operands: constant index_map (fetched once) + a single
            # VMEM buffer; default 2-deep pipelining would only double their VMEM.
            rep = lambda a: pl.BlockSpec(a.shape, lambda i: (0, 0),
                                         pipeline_mode=pl.Buffered(1))
        else:
            rep = lambda a: pl.BlockSpec(a.shape, lambda i: (0, 0))

        return pl.pallas_call(
            kernel,
            out_shape=(
                jax.ShapeDtypeStruct((B_pad, D), recon_dtype),        # x_recon
                jax.ShapeDtypeStruct((n_tiles, 1, L), jnp.float32),   # loss partials
                jax.ShapeDtypeStruct((B_pad, 1), jnp.int32),          # indices column
            ),
            grid_spec=pltpu.PrefetchScalarGridSpec(
                num_scalar_prefetch=0,
                grid=(n_tiles,),
                in_specs=[pl.BlockSpec((tb, D), lambda i: (i, 0))]    # x, batch-tiled
                         + [rep(a) for a in weight_ops],
                out_specs=[
                    pl.BlockSpec((tb, D), lambda i: (i, 0)),
                    pl.BlockSpec((1, 1, L), lambda i: (i, 0, 0)),
                    pl.BlockSpec((tb, 1), lambda i: (i, 0)),
                ],
            ),
            # Every output block is tile-private -> the batch axis is truly
            # parallel (uses both TensorCores on v7x; harmless on v5e/v6e).
            compiler_params=pltpu.CompilerParams(
                dimension_semantics=("parallel",),
                vmem_limit_bytes=vmem_limit),
        )(x_in, *weight_ops)

    if _WEIGHT_SINGLE_BUFFER_OK is None:
        try:
            recon, loss_parts, idx_col = run(True)
            _WEIGHT_SINGLE_BUFFER_OK = True
        except Exception:
            _WEIGHT_SINGLE_BUFFER_OK = False
            recon, loss_parts, idx_col = run(False)
    else:
        recon, loss_parts, idx_col = run(_WEIGHT_SINGLE_BUFFER_OK)

    commitment_loss = jnp.sum(loss_parts) / float(B * L)
    encoding_indices = idx_col[:B, 0]
    x_recon = recon[:B] if mask_tail else recon
    return x_recon, commitment_loss, encoding_indices


# ---------------------------------------------------------------------------
# Parameter init + pure-JAX reference (mirrors the PyTorch module)
# ---------------------------------------------------------------------------
def make_params(key, input_dim, hidden_dim, num_latents):
    """Deterministic parameter init (PyTorch nn.Linear-style uniform bounds)."""
    def linear(k, fan_in, fan_out):
        k1, k2 = jax.random.split(k)
        bound = float(fan_in) ** -0.5
        w = jax.random.uniform(k1, (fan_in, fan_out), jnp.float32, -bound, bound)
        b = jax.random.uniform(k2, (1, fan_out), jnp.float32, -bound, bound)
        return w, b

    keys = jax.random.split(key, 6)
    ew1, eb1 = linear(keys[0], input_dim, hidden_dim)
    ew2, eb2 = linear(keys[1], hidden_dim, hidden_dim)
    ew3, eb3 = linear(keys[2], hidden_dim, num_latents)
    dw1, db1 = linear(keys[3], num_latents, hidden_dim)
    dw2, db2 = linear(keys[4], hidden_dim, hidden_dim)
    dw3, db3 = linear(keys[5], hidden_dim, input_dim)
    return (ew1, eb1, ew2, eb2, ew3, eb3, dw1, db1, dw2, db2, dw3, db3)


def reference_forward(x, params, matmul_dtype=jnp.float32):
    """Pure-JAX mirror of the PyTorch forward (explicit codebook search)."""
    (ew1, eb1, ew2, eb2, ew3, eb3, dw1, db1, dw2, db2, dw3, db3) = params
    L = ew3.shape[1]

    def dense(a, w, b):
        return jnp.dot(a.astype(matmul_dtype), w.astype(matmul_dtype),
                       preferred_element_type=jnp.float32,
                       precision=jax.lax.Precision.HIGHEST) + b

    h = jnp.maximum(dense(x, ew1, eb1), 0.0)
    h = jnp.maximum(dense(h, ew2, eb2), 0.0)
    z = dense(h, ew3, eb3)

    # Codebook rows in itertools.product([0, 1], repeat=L) order (MSB first).
    K = 2 ** L
    cb = ((jnp.arange(K)[:, None]
           >> (L - 1 - jnp.arange(L))[None, :]) & 1).astype(jnp.float32)
    d = jnp.linalg.norm(z[:, None, :] - cb[None, :, :], axis=-1)
    idx = jnp.argmin(d, axis=-1)
    quant = cb[idx]
    loss = jnp.mean((quant - z) ** 2)

    h = jnp.maximum(dense(quant, dw1, db1), 0.0)
    h = jnp.maximum(dense(h, dw2, db2), 0.0)
    recon = dense(h, dw3, db3)
    return recon, loss, idx


if __name__ == "__main__":
    # Small shapes implied by the module: x is (batch, input_dim).
    B, INPUT_DIM, HIDDEN_DIM, NUM_LATENTS = 8, 16, 32, 4

    key = jax.random.PRNGKey(0)
    kx, kp = jax.random.split(key)
    x = jax.random.normal(kx, (B, INPUT_DIM), jnp.float32)
    params = make_params(kp, INPUT_DIM, HIDDEN_DIM, NUM_LATENTS)

    # TODO(synk): the 1%-probability debug print inside BinaryVectorQuantizer
    # (random.random() / pandas value_counts) is training-time logging, not part
    # of the numerical forward pass, and is intentionally omitted.

    # Fast path: bf16 matmuls, weights pre-materialized once (serving case).
    params_bf16 = prepare_params(params, jnp.bfloat16)
    x_recon, commitment_loss, encoding_indices = binary_vqvae_forward(
        x, params_bf16, matmul_dtype=jnp.bfloat16)
    jax.block_until_ready((x_recon, commitment_loss, encoding_indices))
    r_recon, r_loss, r_idx = reference_forward(x, params, matmul_dtype=jnp.bfloat16)
    assert x_recon.shape == (B, INPUT_DIM)
    assert jnp.allclose(x_recon, r_recon, atol=2e-3, rtol=2e-3)
    assert jnp.allclose(commitment_loss, r_loss, atol=1e-4, rtol=1e-3)
    assert jnp.array_equal(encoding_indices, r_idx.astype(jnp.int32))

    # f32 path: faithful to the original PyTorch module numerics.
    recon32, loss32, idx32 = binary_vqvae_forward(x, params, matmul_dtype=jnp.float32)
    jax.block_until_ready((recon32, loss32, idx32))
    s_recon, s_loss, s_idx = reference_forward(x, params, matmul_dtype=jnp.float32)
    assert jnp.allclose(recon32, s_recon, atol=1e-4, rtol=1e-4)
    assert jnp.allclose(loss32, s_loss, atol=1e-5, rtol=1e-4)
    assert jnp.array_equal(idx32, s_idx.astype(jnp.int32))

    print("KERNEL_OK")
</pallas_src>

<mosaic_0001>
module attributes {stable_mosaic.version = 11 : i64} {
  func.func @kernel(%arg0: i32, %arg1: memref<8x16xf32, #tpu.memory_space<vmem>>, %arg2: memref<16x32xbf16, #tpu.memory_space<vmem>>, %arg3: memref<1x32xf32, #tpu.memory_space<vmem>>, %arg4: memref<32x32xbf16, #tpu.memory_space<vmem>>, %arg5: memref<1x32xf32, #tpu.memory_space<vmem>>, %arg6: memref<32x4xbf16, #tpu.memory_space<vmem>>, %arg7: memref<1x4xf32, #tpu.memory_space<vmem>>, %arg8: memref<4x32xbf16, #tpu.memory_space<vmem>>, %arg9: memref<1x32xf32, #tpu.memory_space<vmem>>, %arg10: memref<32x32xbf16, #tpu.memory_space<vmem>>, %arg11: memref<1x32xf32, #tpu.memory_space<vmem>>, %arg12: memref<32x16xbf16, #tpu.memory_space<vmem>>, %arg13: memref<1x16xf32, #tpu.memory_space<vmem>>, %arg14: memref<8x16xf32, #tpu.memory_space<vmem>>, %arg15: memref<1x1x4xf32, #tpu.memory_space<vmem>>, %arg16: memref<8x1xi32, #tpu.memory_space<vmem>>) attributes {dimension_semantics = [#tpu.dimension_semantics<parallel>], iteration_bounds = array<i64: 1>, scalar_prefetch = 0 : i64, scratch_operands = 0 : i64, tpu.core_type = #tpu.core_type<tc>, window_params = [{transform_indices = @transform_0, window_bounds = array<i64: 8, 16>}, {pipeline_mode = #tpu.pipeline_mode<synchronous>, transform_indices = @transform_1, window_bounds = array<i64: 16, 32>}, {pipeline_mode = #tpu.pipeline_mode<synchronous>, transform_indices = @transform_2, window_bounds = array<i64: 1, 32>}, {pipeline_mode = #tpu.pipeline_mode<synchronous>, transform_indices = @transform_3, window_bounds = array<i64: 32, 32>}, {pipeline_mode = #tpu.pipeline_mode<synchronous>, transform_indices = @transform_4, window_bounds = array<i64: 1, 32>}, {pipeline_mode = #tpu.pipeline_mode<synchronous>, transform_indices = @transform_5, window_bounds = array<i64: 32, 4>}, {pipeline_mode = #tpu.pipeline_mode<synchronous>, transform_indices = @transform_6, window_bounds = array<i64: 1, 4>}, {pipeline_mode = #tpu.pipeline_mode<synchronous>, transform_indices = @transform_7, window_bounds = array<i64: 4, 32>}, {pipeline_mode = #tpu.pipeline_mode<synchronous>, transform_indices = @transform_8, window_bounds = array<i64: 1, 32>}, {pipeline_mode = #tpu.pipeline_mode<synchronous>, transform_indices = @transform_9, window_bounds = array<i64: 32, 32>}, {pipeline_mode = #tpu.pipeline_mode<synchronous>, transform_indices = @transform_10, window_bounds = array<i64: 1, 32>}, {pipeline_mode = #tpu.pipeline_mode<synchronous>, transform_indices = @transform_11, window_bounds = array<i64: 32, 16>}, {pipeline_mode = #tpu.pipeline_mode<synchronous>, transform_indices = @transform_12, window_bounds = array<i64: 1, 16>}, {transform_indices = @transform_13, window_bounds = array<i64: 8, 16>}, {transform_indices = @transform_14, window_bounds = array<i64: 1, 1, 4>}, {transform_indices = @transform_15, window_bounds = array<i64: 8, 1>}]} {
    %c0 = arith.constant 0 : index
    %c0_0 = arith.constant 0 : index
    %0 = vector.load %arg1[%c0, %c0_0] : memref<8x16xf32, #tpu.memory_space<vmem>>, vector<8x16xf32>
    %1 = arith.truncf %0 : vector<8x16xf32> to vector<8x16xbf16>
    %c0_1 = arith.constant 0 : index
    %c0_2 = arith.constant 0 : index
    %2 = vector.load %arg2[%c0_1, %c0_2] : memref<16x32xbf16, #tpu.memory_space<vmem>>, vector<16x32xbf16>
    %cst = arith.constant dense<0.000000e+00> : vector<8x32xf32>
    %3 = tpu.matmul %1, %2, %cst {dimension_numbers = #tpu.dot_dimension_numbers<[1], [0], [0], [1], [0, 0, 1, 1], [], []>} : vector<8x16xbf16>, vector<16x32xbf16>, vector<8x32xf32> -> vector<8x32xf32>
    %c0_3 = arith.constant 0 : index
    %c0_4 = arith.constant 0 : index
    %4 = vector.load %arg3[%c0_3, %c0_4] : memref<1x32xf32, #tpu.memory_space<vmem>>, vector<1x32xf32>
    %5 = vector.broadcast %4 : vector<1x32xf32> to vector<8x32xf32>
    %6 = arith.addf %3, %5 : vector<8x32xf32>
    %cst_5 = arith.constant 0.000000e+00 : f32
    %7 = vector.broadcast %cst_5 : f32 to vector<8x32xf32>
    %8 = arith.maximumf %6, %7 : vector<8x32xf32>
    %9 = arith.truncf %8 : vector<8x32xf32> to vector<8x32xbf16>
    %c0_6 = arith.constant 0 : index
    %c0_7 = arith.constant 0 : index
    %10 = vector.load %arg4[%c0_6, %c0_7] : memref<32x32xbf16, #tpu.memory_space<vmem>>, vector<32x32xbf16>
    %cst_8 = arith.constant dense<0.000000e+00> : vector<8x32xf32>
    %11 = tpu.matmul %9, %10, %cst_8 {dimension_numbers = #tpu.dot_dimension_numbers<[1], [0], [0], [1], [0, 0, 1, 1], [], []>} : vector<8x32xbf16>, vector<32x32xbf16>, vector<8x32xf32> -> vector<8x32xf32>
    %c0_9 = arith.constant 0 : index
    %c0_10 = arith.constant 0 : index
    %12 = vector.load %arg5[%c0_9, %c0_10] : memref<1x32xf32, #tpu.memory_space<vmem>>, vector<1x32xf32>
    %13 = vector.broadcast %12 : vector<1x32xf32> to vector<8x32xf32>
    %14 = arith.addf %11, %13 : vector<8x32xf32>
    %cst_11 = arith.constant 0.000000e+00 : f32
    %15 = vector.broadcast %cst_11 : f32 to vector<8x32xf32>
    %16 = arith.maximumf %14, %15 : vector<8x32xf32>
    %17 = arith.truncf %16 : vector<8x32xf32> to vector<8x32xbf16>
    %c0_12 = arith.constant 0 : index
    %c0_13 = arith.constant 0 : index
    %18 = vector.load %arg6[%c0_12, %c0_13] : memref<32x4xbf16, #tpu.memory_space<vmem>>, vector<32x4xbf16>
    %cst_14 = arith.constant dense<0.000000e+00> : vector<8x4xf32>
    %19 = tpu.matmul %17, %18, %cst_14 {dimension_numbers = #tpu.dot_dimension_numbers<[1], [0], [0], [1], [0, 0, 1, 1], [], []>} : vector<8x32xbf16>, vector<32x4xbf16>, vector<8x4xf32> -> vector<8x4xf32>
    %c0_15 = arith.constant 0 : index
    %c0_16 = arith.constant 0 : index
    %20 = vector.load %arg7[%c0_15, %c0_16] : memref<1x4xf32, #tpu.memory_space<vmem>>, vector<1x4xf32>
    %21 = vector.broadcast %20 : vector<1x4xf32> to vector<8x4xf32>
    %22 = arith.addf %19, %21 : vector<8x4xf32>
    %cst_17 = arith.constant 5.000000e-01 : f32
    %23 = vector.broadcast %cst_17 : f32 to vector<8x4xf32>
    %24 = arith.cmpf ogt, %22, %23 : vector<8x4xf32>
    %25 = arith.extui %24 : vector<8x4xi1> to vector<8x4xi32>
    %26 = arith.sitofp %25 : vector<8x4xi32> to vector<8x4xf32>
    %27 = tpu.iota {dimensions = array<i32: 1>} : vector<1x4xi32>
    %c3_i32 = arith.constant 3 : i32
    %28 = vector.broadcast %c3_i32 : i32 to vector<1x4xi32>
    %29 = arith.subi %28, %27 : vector<1x4xi32>
    %c1_i32 = arith.constant 1 : i32
    %30 = vector.broadcast %c1_i32 : i32 to vector<1x4xi32>
    %31 = arith.shli %30, %29 : vector<1x4xi32>
    %32 = arith.sitofp %31 : vector<1x4xi32> to vector<1x4xf32>
    %33 = vector.broadcast %32 : vector<1x4xf32> to vector<8x4xf32>
    %34 = arith.mulf %26, %33 : vector<8x4xf32>
    %cst_18 = arith.constant dense<0.000000e+00> : vector<8xf32>
    %35 = vector.multi_reduction <add>, %34, %cst_18 [1] : vector<8x4xf32> to vector<8xf32>
    %36 = vector.shape_cast %35 : vector<8xf32> to vector<8x1xf32>
    %37 = arith.fptosi %36 : vector<8x1xf32> to vector<8x1xi32>
    %c0_19 = arith.constant 0 : index
    %c0_20 = arith.constant 0 : index
    %38 = vector.load %arg16[%c0_19, %c0_20] : memref<8x1xi32, #tpu.memory_space<vmem>>, vector<8x1xi32>
    tpu.vector_store %arg16[%c0_19, %c0_20], %37 {strides = array<i32>} : memref<8x1xi32, #tpu.memory_space<vmem>>, vector<8x1xi32>,
    %39 = arith.subf %26, %22 : vector<8x4xf32>
    %40 = arith.mulf %39, %39 : vector<8x4xf32>
    %cst_21 = arith.constant dense<0.000000e+00> : vector<4xf32>
    %41 = vector.multi_reduction <add>, %40, %cst_21 [0] : vector<8x4xf32> to vector<4xf32>
    %42 = vector.shape_cast %41 : vector<4xf32> to vector<1x4xf32>
    %43 = vector.shape_cast %42 : vector<1x4xf32> to vector<1x1x4xf32>
    %c0_22 = arith.constant 0 : index
    %c0_23 = arith.constant 0 : index
    %c0_24 = arith.constant 0 : index
    %44 = vector.load %arg15[%c0_22, %c0_23, %c0_24] : memref<1x1x4xf32, #tpu.memory_space<vmem>>, vector<1x1x4xf32>
    tpu.vector_store %arg15[%c0_22, %c0_23, %c0_24], %43 {strides = array<i32>} : memref<1x1x4xf32, #tpu.memory_space<vmem>>, vector<1x1x4xf32>,
    %45 = arith.truncf %26 : vector<8x4xf32> to vector<8x4xbf16>
    %c0_25 = arith.constant 0 : index
    %c0_26 = arith.constant 0 : index
    %46 = vector.load %arg8[%c0_25, %c0_26] : memref<4x32xbf16, #tpu.memory_space<vmem>>, vector<4x32xbf16>
    %cst_27 = arith.constant dense<0.000000e+00> : vector<8x32xf32>
    %47 = tpu.matmul %45, %46, %cst_27 {dimension_numbers = #tpu.dot_dimension_numbers<[1], [0], [0], [1], [0, 0, 1, 1], [], []>} : vector<8x4xbf16>, vector<4x32xbf16>, vector<8x32xf32> -> vector<8x32xf32>
    %c0_28 = arith.constant 0 : index
    %c0_29 = arith.constant 0 : index
    %48 = vector.load %arg9[%c0_28, %c0_29] : memref<1x32xf32, #tpu.memory_space<vmem>>, vector<1x32xf32>
    %49 = vector.broadcast %48 : vector<1x32xf32> to vector<8x32xf32>
    %50 = arith.addf %47, %49 : vector<8x32xf32>
    %cst_30 = arith.constant 0.000000e+00 : f32
    %51 = vector.broadcast %cst_30 : f32 to vector<8x32xf32>
    %52 = arith.maximumf %50, %51 : vector<8x32xf32>
    %53 = arith.truncf %52 : vector<8x32xf32> to vector<8x32xbf16>
    %c0_31 = arith.constant 0 : index
    %c0_32 = arith.constant 0 : index
    %54 = vector.load %arg10[%c0_31, %c0_32] : memref<32x32xbf16, #tpu.memory_space<vmem>>, vector<32x32xbf16>
    %cst_33 = arith.constant dense<0.000000e+00> : vector<8x32xf32>
    %55 = tpu.matmul %53, %54, %cst_33 {dimension_numbers = #tpu.dot_dimension_numbers<[1], [0], [0], [1], [0, 0, 1, 1], [], []>} : vector<8x32xbf16>, vector<32x32xbf16>, vector<8x32xf32> -> vector<8x32xf32>
    %c0_34 = arith.constant 0 : index
    %c0_35 = arith.constant 0 : index
    %56 = vector.load %arg11[%c0_34, %c0_35] : memref<1x32xf32, #tpu.memory_space<vmem>>, vector<1x32xf32>
    %57 = vector.broadcast %56 : vector<1x32xf32> to vector<8x32xf32>
    %58 = arith.addf %55, %57 : vector<8x32xf32>
    %cst_36 = arith.constant 0.000000e+00 : f32
    %59 = vector.broadcast %cst_36 : f32 to vector<8x32xf32>
    %60 = arith.maximumf %58, %59 : vector<8x32xf32>
    %61 = arith.truncf %60 : vector<8x32xf32> to vector<8x32xbf16>
    %c0_37 = arith.constant 0 : index
    %c0_38 = arith.constant 0 : index
    %62 = vector.load %arg12[%c0_37, %c0_38] : memref<32x16xbf16, #tpu.memory_space<vmem>>, vector<32x16xbf16>
    %cst_39 = arith.constant dense<0.000000e+00> : vector<8x16xf32>
    %63 = tpu.matmul %61, %62, %cst_39 {dimension_numbers = #tpu.dot_dimension_numbers<[1], [0], [0], [1], [0, 0, 1, 1], [], []>} : vector<8x32xbf16>, vector<32x16xbf16>, vector<8x16xf32> -> vector<8x16xf32>
    %c0_40 = arith.constant 0 : index
    %c0_41 = arith.constant 0 : index
    %64 = vector.load %arg13[%c0_40, %c0_41] : memref<1x16xf32, #tpu.memory_space<vmem>>, vector<1x16xf32>
    %65 = vector.broadcast %64 : vector<1x16xf32> to vector<8x16xf32>
    %66 = arith.addf %63, %65 : vector<8x16xf32>
    %c0_42 = arith.constant 0 : index
    %c0_43 = arith.constant 0 : index
    %67 = vector.load %arg14[%c0_42, %c0_43] : memref<8x16xf32, #tpu.memory_space<vmem>>, vector<8x16xf32>
    tpu.vector_store %arg14[%c0_42, %c0_43], %66 {strides = array<i32>} : memref<8x16xf32, #tpu.memory_space<vmem>>, vector<8x16xf32>,
    return
  }
  func.func @transform_0(%arg0: i32) -> (i32, i32) {
    %c0_i32 = arith.constant 0 : i32
    %c0_i32_0 = arith.constant 0 : i32
    return %arg0, %c0_i32 : i32, i32
  }
  func.func @transform_1(%arg0: i32) -> (i32, i32) {
    %c0_i32 = arith.constant 0 : i32
    %c0_i32_0 = arith.constant 0 : i32
    %c0_i32_1 = arith.constant 0 : i32
    return %c0_i32, %c0_i32_0 : i32, i32
  }
  func.func @transform_2(%arg0: i32) -> (i32, i32) {
    %c0_i32 = arith.constant 0 : i32
    %c0_i32_0 = arith.constant 0 : i32
    %c0_i32_1 = arith.constant 0 : i32
    return %c0_i32, %c0_i32_0 : i32, i32
  }
  func.func @transform_3(%arg0: i32) -> (i32, i32) {
    %c0_i32 = arith.constant 0 : i32
    %c0_i32_0 = arith.constant 0 : i32
    %c0_i32_1 = arith.constant 0 : i32
    return %c0_i32, %c0_i32_0 : i32, i32
  }
  func.func @transform_4(%arg0: i32) -> (i32, i32) {
    %c0_i32 = arith.constant 0 : i32
    %c0_i32_0 = arith.constant 0 : i32
    %c0_i32_1 = arith.constant 0 : i32
    return %c0_i32, %c0_i32_0 : i32, i32
  }
  func.func @transform_5(%arg0: i32) -> (i32, i32) {
    %c0_i32 = arith.constant 0 : i32
    %c0_i32_0 = arith.constant 0 : i32
    %c0_i32_1 = arith.constant 0 : i32
    return %c0_i32, %c0_i32_0 : i32, i32
  }
  func.func @transform_6(%arg0: i32) -> (i32, i32) {
    %c0_i32 = arith.constant 0 : i32
    %c0_i32_0 = arith.constant 0 : i32
    %c0_i32_1 = arith.constant 0 : i32
    return %c0_i32, %c0_i32_0 : i32, i32
  }
  func.func @transform_7(%arg0: i32) -> (i32, i32) {
    %c0_i32 = arith.constant 0 : i32
    %c0_i32_0 = arith.constant 0 : i32
    %c0_i32_1 = arith.constant 0 : i32
    return %c0_i32, %c0_i32_0 : i32, i32
  }
  func.func @transform_8(%arg0: i32) -> (i32, i32) {
    %c0_i32 = arith.constant 0 : i32
    %c0_i32_0 = arith.constant 0 : i32
    %c0_i32_1 = arith.constant 0 : i32
    return %c0_i32, %c0_i32_0 : i32, i32
  }
  func.func @transform_9(%arg0: i32) -> (i32, i32) {
    %c0_i32 = arith.constant 0 : i32
    %c0_i32_0 = arith.constant 0 : i32
    %c0_i32_1 = arith.constant 0 : i32
    return %c0_i32, %c0_i32_0 : i32, i32
  }
  func.func @transform_10(%arg0: i32) -> (i32, i32) {
    %c0_i32 = arith.constant 0 : i32
    %c0_i32_0 = arith.constant 0 : i32
    %c0_i32_1 = arith.constant 0 : i32
    return %c0_i32, %c0_i32_0 : i32, i32
  }
  func.func @transform_11(%arg0: i32) -> (i32, i32) {
    %c0_i32 = arith.constant 0 : i32
    %c0_i32_0 = arith.constant 0 : i32
    %c0_i32_1 = arith.constant 0 : i32
    return %c0_i32, %c0_i32_0 : i32, i32
  }
  func.func @transform_12(%arg0: i32) -> (i32, i32) {
    %c0_i32 = arith.constant 0 : i32
    %c0_i32_0 = arith.constant 0 : i32
    %c0_i32_1 = arith.constant 0 : i32
    return %c0_i32, %c0_i32_0 : i32, i32
  }
  func.func @transform_13(%arg0: i32) -> (i32, i32) {
    %c0_i32 = arith.constant 0 : i32
    %c0_i32_0 = arith.constant 0 : i32
    return %arg0, %c0_i32 : i32, i32
  }
  func.func @transform_14(%arg0: i32) -> (i32, i32, i32) {
    %c0_i32 = arith.constant 0 : i32
    %c0_i32_0 = arith.constant 0 : i32
    %c0_i32_1 = arith.constant 0 : i32
    return %arg0, %c0_i32, %c0_i32_0 : i32, i32, i32
  }
  func.func @transform_15(%arg0: i32) -> (i32, i32) {
    %c0_i32 = arith.constant 0 : i32
    %c0_i32_0 = arith.constant 0 : i32
    return %arg0, %c0_i32 : i32, i32
  }
}

module attributes {stable_mosaic.version = 11 : i64} {
  func.func @kernel(%arg0: i32, %arg1: memref<8x16xf32, #tpu.memory_space<vmem>>, %arg2: memref<16x32xbf16, #tpu.memory_space<vmem>>, %arg3: memref<1x32xf32, #tpu.memory_space<vmem>>, %arg4: memref<32x32xbf16, #tpu.memory_space<vmem>>, %arg5: memref<1x32xf32, #tpu.memory_space<vmem>>, %arg6: memref<32x4xbf16, #tpu.memory_space<vmem>>, %arg7: memref<1x4xf32, #tpu.memory_space<vmem>>, %arg8: memref<4x32xbf16, #tpu.memory_space<vmem>>, %arg9: memref<1x32xf32, #tpu.memory_space<vmem>>, %arg10: memref<32x32xbf16, #tpu.memory_space<vmem>>, %arg11: memref<1x32xf32, #tpu.memory_space<vmem>>, %arg12: memref<32x16xbf16, #tpu.memory_space<vmem>>, %arg13: memref<1x16xf32, #tpu.memory_space<vmem>>, %arg14: memref<8x16xf32, #tpu.memory_space<vmem>>, %arg15: memref<1x1x4xf32, #tpu.memory_space<vmem>>, %arg16: memref<8x1xi32, #tpu.memory_space<vmem>>) attributes {dimension_semantics = [#tpu.dimension_semantics<parallel>], iteration_bounds = array<i64: 1>, scalar_prefetch = 0 : i64, scratch_operands = 0 : i64, tpu.core_type = #tpu.core_type<tc>, window_params = [{transform_indices = @transform_0, window_bounds = array<i64: 8, 16>}, {pipeline_mode = #tpu.pipeline_mode<synchronous>, transform_indices = @transform_1, window_bounds = array<i64: 16, 32>}, {pipeline_mode = #tpu.pipeline_mode<synchronous>, transform_indices = @transform_2, window_bounds = array<i64: 1, 32>}, {pipeline_mode = #tpu.pipeline_mode<synchronous>, transform_indices = @transform_3, window_bounds = array<i64: 32, 32>}, {pipeline_mode = #tpu.pipeline_mode<synchronous>, transform_indices = @transform_4, window_bounds = array<i64: 1, 32>}, {pipeline_mode = #tpu.pipeline_mode<synchronous>, transform_indices = @transform_5, window_bounds = array<i64: 32, 4>}, {pipeline_mode = #tpu.pipeline_mode<synchronous>, transform_indices = @transform_6, window_bounds = array<i64: 1, 4>}, {pipeline_mode = #tpu.pipeline_mode<synchronous>, transform_indices = @transform_7, window_bounds = array<i64: 4, 32>}, {pipeline_mode = #tpu.pipeline_mode<synchronous>, transform_indices = @transform_8, window_bounds = array<i64: 1, 32>}, {pipeline_mode = #tpu.pipeline_mode<synchronous>, transform_indices = @transform_9, window_bounds = array<i64: 32, 32>}, {pipeline_mode = #tpu.pipeline_mode<synchronous>, transform_indices = @transform_10, window_bounds = array<i64: 1, 32>}, {pipeline_mode = #tpu.pipeline_mode<synchronous>, transform_indices = @transform_11, window_bounds = array<i64: 32, 16>}, {pipeline_mode = #tpu.pipeline_mode<synchronous>, transform_indices = @transform_12, window_bounds = array<i64: 1, 16>}, {transform_indices = @transform_13, window_bounds = array<i64: 8, 16>}, {transform_indices = @transform_14, window_bounds = array<i64: 1, 1, 4>}, {transform_indices = @transform_15, window_bounds = array<i64: 8, 1>}]} {
    %c0 = arith.constant 0 : index
    %c0_0 = arith.constant 0 : index
    %0 = vector.load %arg1[%c0, %c0_0] : memref<8x16xf32, #tpu.memory_space<vmem>>, vector<8x16xf32>
    %1 = arith.truncf %0 : vector<8x16xf32> to vector<8x16xbf16>
    %c0_1 = arith.constant 0 : index
    %c0_2 = arith.constant 0 : index
    %2 = vector.load %arg2[%c0_1, %c0_2] : memref<16x32xbf16, #tpu.memory_space<vmem>>, vector<16x32xbf16>
    %cst = arith.constant dense<0.000000e+00> : vector<8x32xf32>
    %3 = tpu.matmul %1, %2, %cst {dimension_numbers = #tpu.dot_dimension_numbers<[1], [0], [0], [1], [0, 0, 1, 1], [], []>} : vector<8x16xbf16>, vector<16x32xbf16>, vector<8x32xf32> -> vector<8x32xf32>
    %c0_3 = arith.constant 0 : index
    %c0_4 = arith.constant 0 : index
    %4 = vector.load %arg3[%c0_3, %c0_4] : memref<1x32xf32, #tpu.memory_space<vmem>>, vector<1x32xf32>
    %5 = vector.broadcast %4 : vector<1x32xf32> to vector<8x32xf32>
    %6 = arith.addf %3, %5 : vector<8x32xf32>
    %cst_5 = arith.constant 0.000000e+00 : f32
    %7 = vector.broadcast %cst_5 : f32 to vector<8x32xf32>
    %8 = arith.maximumf %6, %7 : vector<8x32xf32>
    %9 = arith.truncf %8 : vector<8x32xf32> to vector<8x32xbf16>
    %c0_6 = arith.constant 0 : index
    %c0_7 = arith.constant 0 : index
    %10 = vector.load %arg4[%c0_6, %c0_7] : memref<32x32xbf16, #tpu.memory_space<vmem>>, vector<32x32xbf16>
    %cst_8 = arith.constant dense<0.000000e+00> : vector<8x32xf32>
    %11 = tpu.matmul %9, %10, %cst_8 {dimension_numbers = #tpu.dot_dimension_numbers<[1], [0], [0], [1], [0, 0, 1, 1], [], []>} : vector<8x32xbf16>, vector<32x32xbf16>, vector<8x32xf32> -> vector<8x32xf32>
    %c0_9 = arith.constant 0 : index
    %c0_10 = arith.constant 0 : index
    %12 = vector.load %arg5[%c0_9, %c0_10] : memref<1x32xf32, #tpu.memory_space<vmem>>, vector<1x32xf32>
    %13 = vector.broadcast %12 : vector<1x32xf32> to vector<8x32xf32>
    %14 = arith.addf %11, %13 : vector<8x32xf32>
    %cst_11 = arith.constant 0.000000e+00 : f32
    %15 = vector.broadcast %cst_11 : f32 to vector<8x32xf32>
    %16 = arith.maximumf %14, %15 : vector<8x32xf32>
    %17 = arith.truncf %16 : vector<8x32xf32> to vector<8x32xbf16>
    %c0_12 = arith.constant 0 : index
    %c0_13 = arith.constant 0 : index
    %18 = vector.load %arg6[%c0_12, %c0_13] : memref<32x4xbf16, #tpu.memory_space<vmem>>, vector<32x4xbf16>
    %cst_14 = arith.constant dense<0.000000e+00> : vector<8x4xf32>
    %19 = tpu.matmul %17, %18, %cst_14 {dimension_numbers = #tpu.dot_dimension_numbers<[1], [0], [0], [1], [0, 0, 1, 1], [], []>} : vector<8x32xbf16>, vector<32x4xbf16>, vector<8x4xf32> -> vector<8x4xf32>
    %c0_15 = arith.constant 0 : index
    %c0_16 = arith.constant 0 : index
    %20 = vector.load %arg7[%c0_15, %c0_16] : memref<1x4xf32, #tpu.memory_space<vmem>>, vector<1x4xf32>
    %21 = vector.broadcast %20 : vector<1x4xf32> to vector<8x4xf32>
    %22 = arith.addf %19, %21 : vector<8x4xf32>
    %cst_17 = arith.constant 5.000000e-01 : f32
    %23 = vector.broadcast %cst_17 : f32 to vector<8x4xf32>
    %24 = arith.cmpf ogt, %22, %23 : vector<8x4xf32>
    %25 = arith.extui %24 : vector<8x4xi1> to vector<8x4xi32>
    %26 = arith.sitofp %25 : vector<8x4xi32> to vector<8x4xf32>
    %27 = tpu.iota {dimensions = array<i32: 1>} : vector<1x4xi32>
    %c3_i32 = arith.constant 3 : i32
    %28 = vector.broadcast %c3_i32 : i32 to vector<1x4xi32>
    %29 = arith.subi %28, %27 : vector<1x4xi32>
    %c1_i32 = arith.constant 1 : i32
    %30 = vector.broadcast %c1_i32 : i32 to vector<1x4xi32>
    %31 = arith.shli %30, %29 : vector<1x4xi32>
    %32 = arith.sitofp %31 : vector<1x4xi32> to vector<1x4xf32>
    %33 = vector.broadcast %32 : vector<1x4xf32> to vector<8x4xf32>
    %34 = arith.mulf %26, %33 : vector<8x4xf32>
    %cst_18 = arith.constant dense<0.000000e+00> : vector<8xf32>
    %35 = vector.multi_reduction <add>, %34, %cst_18 [1] : vector<8x4xf32> to vector<8xf32>
    %36 = vector.shape_cast %35 : vector<8xf32> to vector<8x1xf32>
    %37 = arith.fptosi %36 : vector<8x1xf32> to vector<8x1xi32>
    %c0_19 = arith.constant 0 : index
    %c0_20 = arith.constant 0 : index
    %38 = vector.load %arg16[%c0_19, %c0_20] : memref<8x1xi32, #tpu.memory_space<vmem>>, vector<8x1xi32>
    tpu.vector_store %arg16[%c0_19, %c0_20], %37 {strides = array<i32>} : memref<8x1xi32, #tpu.memory_space<vmem>>, vector<8x1xi32>,
    %39 = arith.subf %26, %22 : vector<8x4xf32>
    %40 = arith.mulf %39, %39 : vector<8x4xf32>
    %cst_21 = arith.constant dense<0.000000e+00> : vector<4xf32>
    %41 = vector.multi_reduction <add>, %40, %cst_21 [0] : vector<8x4xf32> to vector<4xf32>
    %42 = vector.shape_cast %41 : vector<4xf32> to vector<1x4xf32>
    %43 = vector.shape_cast %42 : vector<1x4xf32> to vector<1x1x4xf32>
    %c0_22 = arith.constant 0 : index
    %c0_23 = arith.constant 0 : index
    %c0_24 = arith.constant 0 : index
    %44 = vector.load %arg15[%c0_22, %c0_23, %c0_24] : memref<1x1x4xf32, #tpu.memory_space<vmem>>, vector<1x1x4xf32>
    tpu.vector_store %arg15[%c0_22, %c0_23, %c0_24], %43 {strides = array<i32>} : memref<1x1x4xf32, #tpu.memory_space<vmem>>, vector<1x1x4xf32>,
    %45 = arith.truncf %26 : vector<8x4xf32> to vector<8x4xbf16>
    %c0_25 = arith.constant 0 : index
    %c0_26 = arith.constant 0 : index
    %46 = vector.load %arg8[%c0_25, %c0_26] : memref<4x32xbf16, #tpu.memory_space<vmem>>, vector<4x32xbf16>
    %cst_27 = arith.constant dense<0.000000e+00> : vector<8x32xf32>
    %47 = tpu.matmul %45, %46, %cst_27 {dimension_numbers = #tpu.dot_dimension_numbers<[1], [0], [0], [1], [0, 0, 1, 1], [], []>} : vector<8x4xbf16>, vector<4x32xbf16>, vector<8x32xf32> -> vector<8x32xf32>
    %c0_28 = arith.constant 0 : index
    %c0_29 = arith.constant 0 : index
    %48 = vector.load %arg9[%c0_28, %c0_29] : memref<1x32xf32, #tpu.memory_space<vmem>>, vector<1x32xf32>
    %49 = vector.broadcast %48 : vector<1x32xf32> to vector<8x32xf32>
    %50 = arith.addf %47, %49 : vector<8x32xf32>
    %cst_30 = arith.constant 0.000000e+00 : f32
    %51 = vector.broadcast %cst_30 : f32 to vector<8x32xf32>
    %52 = arith.maximumf %50, %51 : vector<8x32xf32>
    %53 = arith.truncf %52 : vector<8x32xf32> to vector<8x32xbf16>
    %c0_31 = arith.constant 0 : index
    %c0_32 = arith.constant 0 : index
    %54 = vector.load %arg10[%c0_31, %c0_32] : memref<32x32xbf16, #tpu.memory_space<vmem>>, vector<32x32xbf16>
    %cst_33 = arith.constant dense<0.000000e+00> : vector<8x32xf32>
    %55 = tpu.matmul %53, %54, %cst_33 {dimension_numbers = #tpu.dot_dimension_numbers<[1], [0], [0], [1], [0, 0, 1, 1], [], []>} : vector<8x32xbf16>, vector<32x32xbf16>, vector<8x32xf32> -> vector<8x32xf32>
    %c0_34 = arith.constant 0 : index
    %c0_35 = arith.constant 0 : index
    %56 = vector.load %arg11[%c0_34, %c0_35] : memref<1x32xf32, #tpu.memory_space<vmem>>, vector<1x32xf32>
    %57 = vector.broadcast %56 : vector<1x32xf32> to vector<8x32xf32>
    %58 = arith.addf %55, %57 : vector<8x32xf32>
    %cst_36 = arith.constant 0.000000e+00 : f32
    %59 = vector.broadcast %cst_36 : f32 to vector<8x32xf32>
    %60 = arith.maximumf %58, %59 : vector<8x32xf32>
    %61 = arith.truncf %60 : vector<8x32xf32> to vector<8x32xbf16>
    %c0_37 = arith.constant 0 : index
    %c0_38 = arith.constant 0 : index
    %62 = vector.load %arg12[%c0_37, %c0_38] : memref<32x16xbf16, #tpu.memory_space<vmem>>, vector<32x16xbf16>
    %cst_39 = arith.constant dense<0.000000e+00> : vector<8x16xf32>
    %63 = tpu.matmul %61, %62, %cst_39 {dimension_numbers = #tpu.dot_dimension_numbers<[1], [0], [0], [1], [0, 0, 1, 1], [], []>} : vector<8x32xbf16>, vector<32x16xbf16>, vector<8x16xf32> -> vector<8x16xf32>
    %c0_40 = arith.constant 0 : index
    %c0_41 = arith.constant 0 : index
    %64 = vector.load %arg13[%c0_40, %c0_41] : memref<1x16xf32, #tpu.memory_space<vmem>>, vector<1x16xf32>
    %65 = vector.broadcast %64 : vector<1x16xf32> to vector<8x16xf32>
    %66 = arith.addf %63, %65 : vector<8x16xf32>
    %c0_42 = arith.constant 0 : index
    %c0_43 = arith.constant 0 : index
    %67 = vector.load %arg14[%c0_42, %c0_43] : memref<8x16xf32, #tpu.memory_space<vmem>>, vector<8x16xf32>
    tpu.vector_store %arg14[%c0_42, %c0_43], %66 {strides = array<i32>} : memref<8x16xf32, #tpu.memory_space<vmem>>, vector<8x16xf32>,
    return
  }
  func.func @transform_0(%arg0: i32) -> (i32, i32) {
    %c0_i32 = arith.constant 0 : i32
    %c0_i32_0 = arith.constant 0 : i32
    return %arg0, %c0_i32 : i32, i32
  }
  func.func @transform_1(%arg0: i32) -> (i32, i32) {
    %c0_i32 = arith.constant 0 : i32
    %c0_i32_0 = arith.constant 0 : i32
    %c0_i32_1 = arith.constant 0 : i32
    return %c0_i32, %c0_i32_0 : i32, i32
  }
  func.func @transform_2(%arg0: i32) -> (i32, i32) {
    %c0_i32 = arith.constant 0 : i32
    %c0_i32_0 = arith.constant 0 : i32
    %c0_i32_1 = arith.constant 0 : i32
    return %c0_i32, %c0_i32_0 : i32, i32
  }
  func.func @transform_3(%arg0: i32) -> (i32, i32) {
    %c0_i32 = arith.constant 0 : i32
    %c0_i32_0 = arith.constant 0 : i32
    %c0_i32_1 = arith.constant 0 : i32
    return %c0_i32, %c0_i32_0 : i32, i32
  }
  func.func @transform_4(%arg0: i32) -> (i32, i32) {
    %c0_i32 = arith.constant 0 : i32
    %c0_i32_0 = arith.constant 0 : i32
    %c0_i32_1 = arith.constant 0 : i32
    return %c0_i32, %c0_i32_0 : i32, i32
  }
  func.func @transform_5(%arg0: i32) -> (i32, i32) {
    %c0_i32 = arith.constant 0 : i32
    %c0_i32_0 = arith.constant 0 : i32
    %c0_i32_1 = arith.constant 0 : i32
    return %c0_i32, %c0_i32_0 : i32, i32
  }
  func.func @transform_6(%arg0: i32) -> (i32, i32) {
    %c0_i32 = arith.constant 0 : i32
    %c0_i32_0 = arith.constant 0 : i32
    %c0_i32_1 = arith.constant 0 : i32
    return %c0_i32, %c0_i32_0 : i32, i32
  }
  func.func @transform_7(%arg0: i32) -> (i32, i32) {
    %c0_i32 = arith.constant 0 : i32
    %c0_i32_0 = arith.constant 0 : i32
    %c0_i32_1 = arith.constant 0 : i32
    return %c0_i32, %c0_i32_0 : i32, i32
  }
  func.func @transform_8(%arg0: i32) -> (i32, i32) {
    %c0_i32 = arith.constant 0 : i32
    %c0_i32_0 = arith.constant 0 : i32
    %c0_i32_1 = arith.constant 0 : i32
    return %c0_i32, %c0_i32_0 : i32, i32
  }
  func.func @transform_9(%arg0: i32) -> (i32, i32) {
    %c0_i32 = arith.constant 0 : i32
    %c0_i32_0 = arith.constant 0 : i32
    %c0_i32_1 = arith.constant 0 : i32
    return %c0_i32, %c0_i32_0 : i32, i32
  }
  func.func @transform_10(%arg0: i32) -> (i32, i32) {
    %c0_i32 = arith.constant 0 : i32
    %c0_i32_0 = arith.constant 0 : i32
    %c0_i32_1 = arith.constant 0 : i32
    return %c0_i32, %c0_i32_0 : i32, i32
  }
  func.func @transform_11(%arg0: i32) -> (i32, i32) {
    %c0_i32 = arith.constant 0 : i32
    %c0_i32_0 = arith.constant 0 : i32
    %c0_i32_1 = arith.constant 0 : i32
    return %c0_i32, %c0_i32_0 : i32, i32
  }
  func.func @transform_12(%arg0: i32) -> (i32, i32) {
    %c0_i32 = arith.constant 0 : i32
    %c0_i32_0 = arith.constant 0 : i32
    %c0_i32_1 = arith.constant 0 : i32
    return %c0_i32, %c0_i32_0 : i32, i32
  }
  func.func @transform_13(%arg0: i32) -> (i32, i32) {
    %c0_i32 = arith.constant 0 : i32
    %c0_i32_0 = arith.constant 0 : i32
    return %arg0, %c0_i32 : i32, i32
  }
  func.func @transform_14(%arg0: i32) -> (i32, i32, i32) {
    %c0_i32 = arith.constant 0 : i32
    %c0_i32_0 = arith.constant 0 : i32
    %c0_i32_1 = arith.constant 0 : i32
    return %arg0, %c0_i32, %c0_i32_0 : i32, i32, i32
  }
  func.func @transform_15(%arg0: i32) -> (i32, i32) {
    %c0_i32 = arith.constant 0 : i32
    %c0_i32_0 = arith.constant 0 : i32
    return %arg0, %c0_i32 : i32, i32
  }
}

</mosaic_0001>

<bundles_post_ra>
// kernel: tpu_custom_call.1
= control target key start
LH: loop header
LB: loop body
LE: loop exit
PB: predicated region body
PF: predicated region fallthrough
CT: control target
= control target key end

     0   :  { %21 = vsyncpa [#allocation3], 0  ;;  %s724_s0 = inlined_call_operand.hbm [shape: f32[8,16], index: 0, kind: input, shape index: {}]   ;;  %s725_s1 = inlined_call_operand.hbm [shape: bf16[16,32], index: 1, kind: input, shape index: {}]   ;;  %s726_s2 = inlined_call_operand.vmem [shape: f32[1,32], index: 2, kind: input, shape index: {}]   ;;  %s727_s3 = inlined_call_operand.vmem [shape: bf16[32,32], index: 3, kind: input, shape index: {}]   ;;  %s728_s4 = inlined_call_operand.hbm [shape: f32[1,32], index: 4, kind: input, shape index: {}]   ;;  %s729_s5 = inlined_call_operand.vmem [shape: bf16[32,4], index: 5, kind: input, shape index: {}]   ;;  %s730_s6 = inlined_call_operand.vmem [shape: f32[1,4], index: 6, kind: input, shape index: {}]   ;;  %s731_s7 = inlined_call_operand.vmem [shape: bf16[4,32], index: 7, kind: input, shape index: {}]   ;;  %s732_s8 = inlined_call_operand.vmem [shape: f32[1,32], index: 8, kind: input, shape index: {}]   ;;  %s733_s9 = inlined_call_operand.vmem [shape: bf16[32,32], index: 9, kind: input, shape index: {}]   ;;  %s734_s10 = inlined_call_operand.vmem [shape: f32[1,32], index: 10, kind: input, shape index: {}]   ;;  %s735_s11 = inlined_call_operand.vmem [shape: bf16[32,16], index: 11, kind: input, shape index: {}]   ;;  %s736_s12 = inlined_call_operand.vmem [shape: f32[1,16], index: 12, kind: input, shape index: {}]   ;;  %s737_s13 = inlined_call_operand.hbm [shape: f32[8,16], index: 13, kind: output, shape index: {0}]   ;;  %s738_s14 = inlined_call_operand.hbm [shape: f32[1,1,4], index: 14, kind: output, shape index: {1}]   ;;  %s739_s15 = inlined_call_operand.vmem [shape: s32[8,1], index: 15, kind: output, shape index: {2}]  }
   0x1   :  { %22 = vsyncpa [#allocation6], 0 }
   0x2   :  { %23 = vsyncpa [#allocation4], 0  ;;  %s40_s20 = sshll.u32 %s725_s1, 4  ;;  %s41_s20 = int_to_ptr.hbm [resolvable:$true] %s40_s20 }
   0x3   :  { %24 = vsyncpa [#allocation10], 0  ;;  %s569_s21 = smov [#allocation5]   ;;  %s30_s25 = sshll.u32 %s724_s0, 4  ;;  %s31_s25 = int_to_ptr.hbm [resolvable:$true] %s30_s25 }
   0x4   :  { %s42_s22 = sshll.u32 %s569_s21, 4  ;;  %s570_s26 = smov 64   ;;  %s43_s22 = int_to_ptr.vmem [resolvable:$true] %s42_s22 }
   0x5   :  { %s571_s27 = smov 4   ;;  %s572_s28 = smov [#allocation2]  }
   0x6   :  { %48 = dma.hbm_to_vmem [thread:$0]  %s41_s20, 128, %s43_s22, [#allocation6], %s570_s26, %s570_s26, %s571_s27  }
   0x7   :  { %s32_s29 = sshll.u32 %s572_s28, 4  ;;  %s58_s17 = sshll.u32 %s728_s4, 4  ;;  %s33_s29 = int_to_ptr.vmem [resolvable:$true] %s32_s29  ;;  %s59_s17 = int_to_ptr.hbm [resolvable:$true] %s58_s17 }
   0x8   :  { %35 = dma.hbm_to_vmem [thread:$0]  %s31_s25, 128, %s33_s29, [#allocation3]  }
   0x9   :  { %s573_s1 = smov [#allocation7]  }
   0xa   :  { %s60_s18 = sshll.u32 %s573_s1, 4  ;;  %s61_s18 = int_to_ptr.vmem [resolvable:$true] %s60_s18 }
   0xb   :  { %63 = dma.hbm_to_vmem [thread:$0]  %s59_s17, 16, %s61_s18, [#allocation6]  }
   0xc   :  { %561 = dma.done.wait [#allocation3], 128  }
   0xd   :  { %562 = vsyncadd [#allocation3], 4294967168 }
   0xe   :  { %563 = dma.done.wait [#allocation6], 144  }
   0xf   :  { %564 = vsyncadd [#allocation6], 4294967152  ;;  %v412_v0 = vld [vmem:[#allocation5] sm:$0xff]  ;;  %v93_v1 = vld [vmem:[#allocation2] sm:$0xff]  ;;  %vm107_vm0 = vcmask 130048   ;;  %vm146_vm1 = vcmask 261120   ;;  %v204_v21 = vlaneseq }
  0x10   :  { %v94_v2 = vpack.c.bf16 %v93_v1, %v93_v1  ;;  %118 = vmatpush.bf16.msra.mxu0 %v412_v0  ;;  %v414_v3 = vld [vmem:[%s727_s3 + $0x8] sm:$0xff]  ;;  %v413_v4 = vld [vmem:[%s727_s3] sm:$0xff]  ;;  %v436_v13 = vld [vmem:[#allocation7] ss:$0 sm:$0xff]  ;;  %vm237_vm2 = vcmask 1041408   ;;  %v574_v25 = vmov 1  }
  0x11   :  { %156 = vmatpush.bf16.msra.mxu1 %v414_v3  ;;  %v435_v5 = vld [vmem:[%s726_s2] ss:$0 sm:$0xff]  ;;  %v416_v11 = vld [vmem:[%s729_s5 + $0x8] sm:$0xff]  ;;  %v205_v22 = vand.u32 127, %v204_v21  ;;  %v575_v30 = vmov 0.0   ;;  %vm210_vm4 = vcmask 31744  }
  0x12   :  { %194 = vmatpush.bf16.msra.mxu2 %v416_v11  ;;  %v415_v12 = vld [vmem:[%s729_s5] sm:$0xff]  ;;  %vm226_vm5 = vcmask 24576   ;;  %v418_v45 = vld [vmem:[%s733_s9 + $0x8] sm:$0xff]  ;;  %vm215_vm7 = vcmask 7168   ;;  %s349_s22 = sshll.u32 %s738_s14, 4  ;;  %s338_s26 = sshll.u32 %s737_s13, 4  ;;  %s350_s22 = int_to_ptr.hbm [resolvable:$true] %s349_s22  ;;  %s339_s26 = int_to_ptr.hbm [resolvable:$true] %s338_s26 }
  0x13   :  { %373 = vmatmul.msk.bf16.vlgmr.msra.gmra.mxu0 %vm107_vm0, %v94_v2  ;;  %v229_v19 = vld [vmem:[%s731_s7] sm:$0x3]  ;;  %v206_v23 = vsub.s32 3, %v205_v22  ;;  %v420_v47 = vld [vmem:[%s735_s11 + $0x8] sm:$0xff] }
  0x14   :  { %v239_v20 = vsel %vm237_vm2, %v229_v19, 0  ;;  %v437_v24 = vld [vmem:[%s730_s6] ss:$0 sm:$0xff]  ;;  %285 = vmatpush.bf16.msrb.mxu0 %v418_v45 }
  0x15   :  { %157 = vmatpush.bf16.msra.mxu1 %v413_v4  ;;  %248 = vmatpush.bf16.msra.mxu3 %v239_v20  ;;  %v207_v26 = vshll.u32 %v574_v25, %v206_v23  ;;  %v417_v46 = vld [vmem:[%s733_s9] sm:$0xff] }
  0x16   :  { %195 = vmatpush.bf16.msra.mxu2 %v415_v12  ;;  %v419_v48 = vld [vmem:[%s735_s11] sm:$0xff] }
  0x17   :  { %v208_v29 = vcvt.s32.f32 %v207_v26  ;;  %v438_v54 = vld [vmem:[%s732_s8] ss:$0 sm:$0xff] }
  0x18   :  { %286 = vmatpush.bf16.msrb.mxu0 %v417_v46  ;;  %v439_v60 = vld [vmem:[%s734_s10] ss:$0 sm:$0xff]  ;;  %s577_s10 = smov [#allocation8]  }
  0x19   :  { %323 = vmatpush.bf16.msrb.mxu3 %v420_v47  ;;  %v440_v2 = vld [vmem:[%s736_s12] ss:$0 sm:$0xff]  ;;  %s336_s25 = sshll.u32 %s577_s10, 4  ;;  %s337_s25 = int_to_ptr.vmem [resolvable:$true] %s336_s25 }
  0x1d   :  { %324 = vmatpush.bf16.msrb.mxu3 %v419_v48 }
  0x90   :  { %v120_v6 = vpop.f32.mrf.mxu0 }
  0x91   :  { %v121_v7 = vadd.f32 %v435_v5, %v120_v6 }
  0x93   :  { %v124_v8 = vmax.f32 %v121_v7, 0.0 }
  0x95   :  { %v125_v9 = vpack.c.bf16 %v124_v8, %v124_v8 }
  0x97   :  { %382 = vmatmul.msk.bf16.vlgmr.msra.gmra.mxu1 %vm146_vm1, %v125_v9 }
  0x98   :  { %v122_v10 = vpop.f32.mrf.mxu0 }
 0x114   :  { %v159_v14 = vpop.f32.mrf.mxu1 }
 0x115   :  { %v160_v15 = vadd.f32 %v436_v13, %v159_v14 }
 0x117   :  { %v163_v16 = vmax.f32 %v160_v15, 0.0 }
 0x119   :  { %v164_v17 = vpack.c.bf16 %v163_v16, %v163_v16 }
 0x11b   :  { %391 = vmatmul.msk.bf16.vlgmr.msra.gmra.mxu2 %vm146_vm1, %v164_v17 }
 0x11c   :  { %v161_v18 = vpop.f32.mrf.mxu1 }
 0x19e   :  { %v197_v27 = vpop.f32.mrf.mxu2 }
 0x19f   :  { %v198_v28 = vadd.f32 %v437_v24, %v197_v27 }
 0x1a1   :  { %vm201_vm3 = vcmp.gt.f32.partialorder %v198_v28, 0.5 }
 0x1a2   :  { %v392_v31 = vsel %vm201_vm3, 1.0, %v575_v30 }
 0x1a3   :  { %v217_v32 = vsub.f32 %v392_v31, %v198_v28  ;;  %v228_v33 = vpack.c.bf16 %v392_v31, %v392_v31  ;;  %v209_v34 = vmul.f32 %v392_v31, %v208_v29 }
 0x1a5   :  { %v218_v35 = vmul.f32 %v217_v32, %v217_v32  ;;  %393 = vmatmul.msk.bf16.vlgmr.msra.gmra.mxu3 %vm210_vm4, %v228_v33  ;;  %v211_v36 = vsel %vm210_vm4, %v209_v34, 0.0 }
 0x1a6   :  { %v199_v37 = vpop.f32.mrf.mxu2  ;;  %212 = vadd.xlane.f32.xlu0 %v211_v36 }
 0x1a7   :  { %v219_v38 = vsel %vm210_vm4, %v218_v35, 0.0 }
 0x1a8   :  { %v220_v39 = vrot.slane %v219_v38, 4 }
 0x1aa   :  { %v221_v40 = vadd.f32 %v220_v39, %v219_v38 }
 0x1ac   :  { %v222_v41 = vrot.slane %v221_v40, 2 }
 0x1ae   :  { %v223_v42 = vadd.f32 %v222_v41, %v221_v40 }
 0x1b0   :  { %v224_v43 = vrot.slane %v223_v42, 1 }
 0x1b2   :  { %v225_v44 = vadd.f32 %v224_v43, %v223_v42 }
 0x1b4   :  { %227 = vst.msk [vmem:[#allocation9] sm:$0x1] %vm226_vm5, %v225_v44 }
 0x219   :  { %v213_v49 = vpop.xlane.xlu0 %212 }
 0x21a   :  { %vm421_vm6 = vcmp.lt.s32.totalorder %v213_v49, 0  ;;  %v422_v50 = vceil.f32 %v213_v49  ;;  %v423_v51 = vfloor.f32 %v213_v49 }
 0x21c   :  { %v424_v52 = vsel %vm421_vm6, %v422_v50, %v423_v51 }
 0x21d   :  { %v425_v53 = vcvt.f32.s32 %v424_v52 }
 0x21f   :  { %216 = vst.msk [vmem:[%s739_s15] sm:$0xff] %vm215_vm7, %v425_v53  ;;  %s576_s15 = smov [#allocation9]  }
 0x220   :  { %s347_s8 = sshll.u32 %s576_s15, 4  ;;  %s348_s8 = int_to_ptr.vmem [resolvable:$true] %s347_s8 }
 0x221   :  { %352 = dma.vmem_to_hbm [thread:$0]  %s348_s8, 16, %s350_s22, [#allocation10]  }
 0x228   :  { %v250_v55 = vpop.f32.mrf.mxu3 }
 0x229   :  { %v251_v56 = vadd.f32 %v438_v54, %v250_v55 }
 0x22b   :  { %v254_v57 = vmax.f32 %v251_v56, 0.0 }
 0x22d   :  { %v255_v58 = vpack.c.bf16 %v254_v57, %v254_v57 }
 0x22f   :  { %402 = vmatmul.msk.bf16.vlgmr.msrb.gmra.mxu0 %vm146_vm1, %v255_v58 }
 0x230   :  { %v252_v59 = vpop.f32.mrf.mxu3 }
 0x2ac   :  { %v288_v61 = vpop.f32.mrf.mxu0 }
 0x2ad   :  { %v289_v62 = vadd.f32 %v439_v60, %v288_v61 }
 0x2af   :  { %v292_v63 = vmax.f32 %v289_v62, 0.0 }
 0x2b1   :  { %v293_v0 = vpack.c.bf16 %v292_v63, %v292_v63 }
 0x2b3   :  { %411 = vmatmul.msk.bf16.vlgmr.msrb.gmra.mxu3 %vm146_vm1, %v293_v0 }
 0x2b4   :  { %v290_v1 = vpop.f32.mrf.mxu0 }
 0x336   :  { %v326_v3 = vpop.f32.mrf.mxu3 }
 0x337   :  { %v327_v4 = vadd.f32 %v440_v2, %v326_v3 }
 0x339   :  { %330 = vst.msk [vmem:[#allocation8] sm:$0xff] %vm107_vm0, %v327_v4 }
 0x33a   :  { %341 = dma.vmem_to_hbm [thread:$0]  %s337_s25, 128, %s339_s26, [#allocation4]  }
 0x33e   :  { %v328_v5 = vpop.f32.mrf.mxu3 }
 0x33f   :  { %565 = dma.done.wait [#allocation4], 128  }
 0x340   :  { %566 = vsyncadd [#allocation4], 4294967168 }
 0x341   :  { %567 = dma.done.wait [#allocation10], 16  }
 0x342   :  { %568 = vsyncadd [#allocation10], 4294967280 }
 0x343   :  { %365 = vsyncpa [#allocation3], 1 }
 0x344   :  { %366 = vsyncpa [#allocation6], 1 }
 0x345   :  { %367 = vsyncpa [#allocation4], 1 }
 0x346   :  { %368 = vsyncpa [#allocation10], 1 }

// kernel: tpu_custom_call.1
= control target key start
LH: loop header
LB: loop body
LE: loop exit
PB: predicated region body
PF: predicated region fallthrough
CT: control target
= control target key end

     0   :  { %21 = vsyncpa [#allocation3], 0  ;;  %s724_s0 = inlined_call_operand.hbm [shape: f32[8,16], index: 0, kind: input, shape index: {}]   ;;  %s725_s1 = inlined_call_operand.hbm [shape: bf16[16,32], index: 1, kind: input, shape index: {}]   ;;  %s726_s2 = inlined_call_operand.vmem [shape: f32[1,32], index: 2, kind: input, shape index: {}]   ;;  %s727_s3 = inlined_call_operand.vmem [shape: bf16[32,32], index: 3, kind: input, shape index: {}]   ;;  %s728_s4 = inlined_call_operand.hbm [shape: f32[1,32], index: 4, kind: input, shape index: {}]   ;;  %s729_s5 = inlined_call_operand.vmem [shape: bf16[32,4], index: 5, kind: input, shape index: {}]   ;;  %s730_s6 = inlined_call_operand.vmem [shape: f32[1,4], index: 6, kind: input, shape index: {}]   ;;  %s731_s7 = inlined_call_operand.vmem [shape: bf16[4,32], index: 7, kind: input, shape index: {}]   ;;  %s732_s8 = inlined_call_operand.vmem [shape: f32[1,32], index: 8, kind: input, shape index: {}]   ;;  %s733_s9 = inlined_call_operand.vmem [shape: bf16[32,32], index: 9, kind: input, shape index: {}]   ;;  %s734_s10 = inlined_call_operand.vmem [shape: f32[1,32], index: 10, kind: input, shape index: {}]   ;;  %s735_s11 = inlined_call_operand.vmem [shape: bf16[32,16], index: 11, kind: input, shape index: {}]   ;;  %s736_s12 = inlined_call_operand.vmem [shape: f32[1,16], index: 12, kind: input, shape index: {}]   ;;  %s737_s13 = inlined_call_operand.hbm [shape: f32[8,16], index: 13, kind: output, shape index: {0}]   ;;  %s738_s14 = inlined_call_operand.hbm [shape: f32[1,1,4], index: 14, kind: output, shape index: {1}]   ;;  %s739_s15 = inlined_call_operand.vmem [shape: s32[8,1], index: 15, kind: output, shape index: {2}]  }
   0x1   :  { %22 = vsyncpa [#allocation6], 0 }
   0x2   :  { %23 = vsyncpa [#allocation4], 0  ;;  %s40_s20 = sshll.u32 %s725_s1, 4  ;;  %s41_s20 = int_to_ptr.hbm [resolvable:$true] %s40_s20 }
   0x3   :  { %24 = vsyncpa [#allocation10], 0  ;;  %s569_s21 = smov [#allocation5]   ;;  %s30_s25 = sshll.u32 %s724_s0, 4  ;;  %s31_s25 = int_to_ptr.hbm [resolvable:$true] %s30_s25 }
   0x4   :  { %s42_s22 = sshll.u32 %s569_s21, 4  ;;  %s570_s26 = smov 64   ;;  %s43_s22 = int_to_ptr.vmem [resolvable:$true] %s42_s22 }
   0x5   :  { %s571_s27 = smov 4   ;;  %s572_s28 = smov [#allocation2]  }
   0x6   :  { %48 = dma.hbm_to_vmem [thread:$0]  %s41_s20, 128, %s43_s22, [#allocation6], %s570_s26, %s570_s26, %s571_s27  }
   0x7   :  { %s32_s29 = sshll.u32 %s572_s28, 4  ;;  %s58_s17 = sshll.u32 %s728_s4, 4  ;;  %s33_s29 = int_to_ptr.vmem [resolvable:$true] %s32_s29  ;;  %s59_s17 = int_to_ptr.hbm [resolvable:$true] %s58_s17 }
   0x8   :  { %35 = dma.hbm_to_vmem [thread:$0]  %s31_s25, 128, %s33_s29, [#allocation3]  }
   0x9   :  { %s573_s1 = smov [#allocation7]  }
   0xa   :  { %s60_s18 = sshll.u32 %s573_s1, 4  ;;  %s61_s18 = int_to_ptr.vmem [resolvable:$true] %s60_s18 }
   0xb   :  { %63 = dma.hbm_to_vmem [thread:$0]  %s59_s17, 16, %s61_s18, [#allocation6]  }
   0xc   :  { %561 = dma.done.wait [#allocation3], 128  }
   0xd   :  { %562 = vsyncadd [#allocation3], 4294967168 }
   0xe   :  { %563 = dma.done.wait [#allocation6], 144  }
   0xf   :  { %564 = vsyncadd [#allocation6], 4294967152  ;;  %v412_v0 = vld [vmem:[#allocation5] sm:$0xff]  ;;  %v93_v1 = vld [vmem:[#allocation2] sm:$0xff]  ;;  %vm107_vm0 = vcmask 130048   ;;  %vm146_vm1 = vcmask 261120   ;;  %v204_v21 = vlaneseq }
  0x10   :  { %v94_v2 = vpack.c.bf16 %v93_v1, %v93_v1  ;;  %118 = vmatpush.bf16.msra.mxu0 %v412_v0  ;;  %v414_v3 = vld [vmem:[%s727_s3 + $0x8] sm:$0xff]  ;;  %v413_v4 = vld [vmem:[%s727_s3] sm:$0xff]  ;;  %v436_v13 = vld [vmem:[#allocation7] ss:$0 sm:$0xff]  ;;  %vm237_vm2 = vcmask 1041408   ;;  %v574_v25 = vmov 1  }
  0x11   :  { %156 = vmatpush.bf16.msra.mxu1 %v414_v3  ;;  %v435_v5 = vld [vmem:[%s726_s2] ss:$0 sm:$0xff]  ;;  %v416_v11 = vld [vmem:[%s729_s5 + $0x8] sm:$0xff]  ;;  %v205_v22 = vand.u32 127, %v204_v21  ;;  %v575_v30 = vmov 0.0   ;;  %vm210_vm4 = vcmask 31744  }
  0x12   :  { %194 = vmatpush.bf16.msra.mxu2 %v416_v11  ;;  %v415_v12 = vld [vmem:[%s729_s5] sm:$0xff]  ;;  %vm226_vm5 = vcmask 24576   ;;  %v418_v45 = vld [vmem:[%s733_s9 + $0x8] sm:$0xff]  ;;  %vm215_vm7 = vcmask 7168   ;;  %s349_s22 = sshll.u32 %s738_s14, 4  ;;  %s338_s26 = sshll.u32 %s737_s13, 4  ;;  %s350_s22 = int_to_ptr.hbm [resolvable:$true] %s349_s22  ;;  %s339_s26 = int_to_ptr.hbm [resolvable:$true] %s338_s26 }
  0x13   :  { %373 = vmatmul.msk.bf16.vlgmr.msra.gmra.mxu0 %vm107_vm0, %v94_v2  ;;  %v229_v19 = vld [vmem:[%s731_s7] sm:$0x3]  ;;  %v206_v23 = vsub.s32 3, %v205_v22  ;;  %v420_v47 = vld [vmem:[%s735_s11 + $0x8] sm:$0xff] }
  0x14   :  { %v239_v20 = vsel %vm237_vm2, %v229_v19, 0  ;;  %v437_v24 = vld [vmem:[%s730_s6] ss:$0 sm:$0xff]  ;;  %285 = vmatpush.bf16.msrb.mxu0 %v418_v45 }
  0x15   :  { %157 = vmatpush.bf16.msra.mxu1 %v413_v4  ;;  %248 = vmatpush.bf16.msra.mxu3 %v239_v20  ;;  %v207_v26 = vshll.u32 %v574_v25, %v206_v23  ;;  %v417_v46 = vld [vmem:[%s733_s9] sm:$0xff] }
  0x16   :  { %195 = vmatpush.bf16.msra.mxu2 %v415_v12  ;;  %v419_v48 = vld [vmem:[%s735_s11] sm:$0xff] }
  0x17   :  { %v208_v29 = vcvt.s32.f32 %v207_v26  ;;  %v438_v54 = vld [vmem:[%s732_s8] ss:$0 sm:$0xff] }
  0x18   :  { %286 = vmatpush.bf16.msrb.mxu0 %v417_v46  ;;  %v439_v60 = vld [vmem:[%s734_s10] ss:$0 sm:$0xff]  ;;  %s577_s10 = smov [#allocation8]  }
  0x19   :  { %323 = vmatpush.bf16.msrb.mxu3 %v420_v47  ;;  %v440_v2 = vld [vmem:[%s736_s12] ss:$0 sm:$0xff]  ;;  %s336_s25 = sshll.u32 %s577_s10, 4  ;;  %s337_s25 = int_to_ptr.vmem [resolvable:$true] %s336_s25 }
  0x1d   :  { %324 = vmatpush.bf16.msrb.mxu3 %v419_v48 }
  0x90   :  { %v120_v6 = vpop.f32.mrf.mxu0 }
  0x91   :  { %v121_v7 = vadd.f32 %v435_v5, %v120_v6 }
  0x93   :  { %v124_v8 = vmax.f32 %v121_v7, 0.0 }
  0x95   :  { %v125_v9 = vpack.c.bf16 %v124_v8, %v124_v8 }
  0x97   :  { %382 = vmatmul.msk.bf16.vlgmr.msra.gmra.mxu1 %vm146_vm1, %v125_v9 }
  0x98   :  { %v122_v10 = vpop.f32.mrf.mxu0 }
 0x114   :  { %v159_v14 = vpop.f32.mrf.mxu1 }
 0x115   :  { %v160_v15 = vadd.f32 %v436_v13, %v159_v14 }
 0x117   :  { %v163_v16 = vmax.f32 %v160_v15, 0.0 }
 0x119   :  { %v164_v17 = vpack.c.bf16 %v163_v16, %v163_v16 }
 0x11b   :  { %391 = vmatmul.msk.bf16.vlgmr.msra.gmra.mxu2 %vm146_vm1, %v164_v17 }
 0x11c   :  { %v161_v18 = vpop.f32.mrf.mxu1 }
 0x19e   :  { %v197_v27 = vpop.f32.mrf.mxu2 }
 0x19f   :  { %v198_v28 = vadd.f32 %v437_v24, %v197_v27 }
 0x1a1   :  { %vm201_vm3 = vcmp.gt.f32.partialorder %v198_v28, 0.5 }
 0x1a2   :  { %v392_v31 = vsel %vm201_vm3, 1.0, %v575_v30 }
 0x1a3   :  { %v217_v32 = vsub.f32 %v392_v31, %v198_v28  ;;  %v228_v33 = vpack.c.bf16 %v392_v31, %v392_v31  ;;  %v209_v34 = vmul.f32 %v392_v31, %v208_v29 }
 0x1a5   :  { %v218_v35 = vmul.f32 %v217_v32, %v217_v32  ;;  %393 = vmatmul.msk.bf16.vlgmr.msra.gmra.mxu3 %vm210_vm4, %v228_v33  ;;  %v211_v36 = vsel %vm210_vm4, %v209_v34, 0.0 }
 0x1a6   :  { %v199_v37 = vpop.f32.mrf.mxu2  ;;  %212 = vadd.xlane.f32.xlu0 %v211_v36 }
 0x1a7   :  { %v219_v38 = vsel %vm210_vm4, %v218_v35, 0.0 }
 0x1a8   :  { %v220_v39 = vrot.slane %v219_v38, 4 }
 0x1aa   :  { %v221_v40 = vadd.f32 %v220_v39, %v219_v38 }
 0x1ac   :  { %v222_v41 = vrot.slane %v221_v40, 2 }
 0x1ae   :  { %v223_v42 = vadd.f32 %v222_v41, %v221_v40 }
 0x1b0   :  { %v224_v43 = vrot.slane %v223_v42, 1 }
 0x1b2   :  { %v225_v44 = vadd.f32 %v224_v43, %v223_v42 }
 0x1b4   :  { %227 = vst.msk [vmem:[#allocation9] sm:$0x1] %vm226_vm5, %v225_v44 }
 0x219   :  { %v213_v49 = vpop.xlane.xlu0 %212 }
 0x21a   :  { %vm421_vm6 = vcmp.lt.s32.totalorder %v213_v49, 0  ;;  %v422_v50 = vceil.f32 %v213_v49  ;;  %v423_v51 = vfloor.f32 %v213_v49 }
 0x21c   :  { %v424_v52 = vsel %vm421_vm6, %v422_v50, %v423_v51 }
 0x21d   :  { %v425_v53 = vcvt.f32.s32 %v424_v52 }
 0x21f   :  { %216 = vst.msk [vmem:[%s739_s15] sm:$0xff] %vm215_vm7, %v425_v53  ;;  %s576_s15 = smov [#allocation9]  }
 0x220   :  { %s347_s8 = sshll.u32 %s576_s15, 4  ;;  %s348_s8 = int_to_ptr.vmem [resolvable:$true] %s347_s8 }
 0x221   :  { %352 = dma.vmem_to_hbm [thread:$0]  %s348_s8, 16, %s350_s22, [#allocation10]  }
 0x228   :  { %v250_v55 = vpop.f32.mrf.mxu3 }
 0x229   :  { %v251_v56 = vadd.f32 %v438_v54, %v250_v55 }
 0x22b   :  { %v254_v57 = vmax.f32 %v251_v56, 0.0 }
 0x22d   :  { %v255_v58 = vpack.c.bf16 %v254_v57, %v254_v57 }
 0x22f   :  { %402 = vmatmul.msk.bf16.vlgmr.msrb.gmra.mxu0 %vm146_vm1, %v255_v58 }
 0x230   :  { %v252_v59 = vpop.f32.mrf.mxu3 }
 0x2ac   :  { %v288_v61 = vpop.f32.mrf.mxu0 }
 0x2ad   :  { %v289_v62 = vadd.f32 %v439_v60, %v288_v61 }
 0x2af   :  { %v292_v63 = vmax.f32 %v289_v62, 0.0 }
 0x2b1   :  { %v293_v0 = vpack.c.bf16 %v292_v63, %v292_v63 }
 0x2b3   :  { %411 = vmatmul.msk.bf16.vlgmr.msrb.gmra.mxu3 %vm146_vm1, %v293_v0 }
 0x2b4   :  { %v290_v1 = vpop.f32.mrf.mxu0 }
 0x336   :  { %v326_v3 = vpop.f32.mrf.mxu3 }
 0x337   :  { %v327_v4 = vadd.f32 %v440_v2, %v326_v3 }
 0x339   :  { %330 = vst.msk [vmem:[#allocation8] sm:$0xff] %vm107_vm0, %v327_v4 }
 0x33a   :  { %341 = dma.vmem_to_hbm [thread:$0]  %s337_s25, 128, %s339_s26, [#allocation4]  }
 0x33e   :  { %v328_v5 = vpop.f32.mrf.mxu3 }
 0x33f   :  { %565 = dma.done.wait [#allocation4], 128  }
 0x340   :  { %566 = vsyncadd [#allocation4], 4294967168 }
 0x341   :  { %567 = dma.done.wait [#allocation10], 16  }
 0x342   :  { %568 = vsyncadd [#allocation10], 4294967280 }
 0x343   :  { %365 = vsyncpa [#allocation3], 1 }
 0x344   :  { %366 = vsyncpa [#allocation6], 1 }
 0x345   :  { %367 = vsyncpa [#allocation4], 1 }
 0x346   :  { %368 = vsyncpa [#allocation10], 1 }

</bundles_post_ra>
